<compile_context>
chip_gen: v6e
topology: v6e:2x2x1
jax: 0.10.0
libtpu: 0.0.40
codegen_flags: <defaults>
</compile_context>

<pallas_src>
import functools

import numpy as np
import jax
import jax.numpy as jnp
from jax import lax
from jax.experimental import pallas as pl
from jax.experimental.pallas import tpu as pltpu


def _cdiv(a: int, b: int) -> int:
    return -(-a // b)


# ---------------------------------------------------------------------------
# Weight init (replicates Blurkernel.weights_init for blur_type='gaussian')
# ---------------------------------------------------------------------------
def gaussian_taps(kernel_size: int, std: float) -> np.ndarray:
    """1-D taps of scipy.ndimage.gaussian_filter applied to a centered impulse.

    For radius = int(4*std + 0.5) <= kernel_size//2 the scipy result is exactly
    the outer product of this normalized truncated 1-D Gaussian (zero-padded to
    kernel_size), which the PyTorch module copies into every depthwise filter.
    (Covers the module default kernel_size=31, std=3.0.)
    """
    assert kernel_size % 2 == 1, "kernel_size must be odd for same-size output"
    radius = int(4.0 * std + 0.5)
    c = kernel_size // 2
    # TODO(synk): std large enough that scipy's reflect boundary inside the KxK
    #   window matters (radius > K//2) is not replicated here.
    assert radius <= c, "std too large for the truncated-Gaussian construction"
    xs = np.arange(-radius, radius + 1, dtype=np.float64)
    g = np.exp(-0.5 * (xs / std) ** 2)
    g /= g.sum()
    taps = np.zeros((kernel_size,), dtype=np.float64)
    taps[c - radius: c + radius + 1] = g
    return taps


def _reflect_band_matrix(n: int, taps: np.ndarray) -> np.ndarray:
    """(n, n) matrix applying 1-D cross-correlation with `taps` under
    ReflectionPad1d(K//2) semantics (ReflectionPad2d along one axis)."""
    K = taps.shape[0]
    pad = K // 2
    assert pad <= n - 1, "reflection pad must be smaller than the spatial size"
    m = np.zeros((n, n), dtype=np.float64)
    for i in range(n):
        for t in range(K):
            j = i - pad + t
            if j < 0:
                j = -j
            elif j > n - 1:
                j = 2 * (n - 1) - j
            m[i, j] += taps[t]
    return m


# ---------------------------------------------------------------------------
# Chip-aware configuration (VMEM budgets, TensorCore count heuristic)
# ---------------------------------------------------------------------------
@functools.lru_cache(maxsize=1)
def _chip_config():
    """Returns (vmem_plan_budget_bytes, vmem_limit_bytes, two_tensorcores)."""
    kind = ""
    try:
        kind = jax.devices()[0].device_kind.lower()
    except Exception:  # pragma: no cover - defensive
        pass
    two_tc = any(tag in kind for tag in ("v7", "7x", "v4", "v5p"))
    small_vmem = ("v7" in kind) or ("7x" in kind)     # v7x: 64 MiB per TC
    if small_vmem:
        return 24 * 1024 * 1024, 32 * 1024 * 1024, two_tc
    # v5e / v6e (and v4/v5p): 128 MiB physical VMEM
    return 48 * 1024 * 1024, 64 * 1024 * 1024, two_tc


# ---------------------------------------------------------------------------
# Cached host-built operators (device arrays, bf16 for single-pass MXU)
# ---------------------------------------------------------------------------
@functools.lru_cache(maxsize=32)
def _flat_operator(H: int, W: int, taps_bytes: bytes):
    taps = np.frombuffer(taps_bytes, dtype=np.float64)
    gh = _reflect_band_matrix(H, taps)
    gw = _reflect_band_matrix(W, taps)
    mt = np.ascontiguousarray(np.kron(gh, gw).T)       # (HW, HW)
    return jnp.asarray(mt, jnp.bfloat16)


@functools.lru_cache(maxsize=32)
def _separable_operators(H: int, W: int, W_pad: int, taps_bytes: bytes):
    taps = np.frombuffer(taps_bytes, dtype=np.float64)
    gh = _reflect_band_matrix(H, taps)                 # applied on the left
    gw_t = _reflect_band_matrix(W, taps).T             # applied on the right
    gw_t_pad = np.zeros((W_pad, W_pad), dtype=np.float64)
    gw_t_pad[:W, :W] = gw_t
    return (jnp.asarray(np.ascontiguousarray(gh), jnp.bfloat16),
            jnp.asarray(np.ascontiguousarray(gw_t_pad), jnp.bfloat16))


# ---------------------------------------------------------------------------
# Path 1: tiny images -> single fused lane-dense matmul
#   out_flat (P, HW) = x_flat (P, HW) @ kron(Gh, Gw)^T (HW, HW)
# ---------------------------------------------------------------------------
def _flat_blur_kernel(x_ref, mt_ref, o_ref):
    o_ref[...] = jnp.dot(
        x_ref[...], mt_ref[...],
        preferred_element_type=jnp.float32,            # bf16 x bf16 -> f32 acc
    ).astype(o_ref.dtype)


def _flat_blur(x2d: jnp.ndarray, mt: jnp.ndarray, *, two_tc: bool,
               vmem_limit: int) -> jnp.ndarray:
    P, HW = x2d.shape
    # Single-TC chips: grid=(1,), splitting is pure per-step overhead.
    # Dual-TC chips: split the lane dim so the "parallel" axis shards over TCs.
    n_tile = HW // 2 if (two_tc and HW % 256 == 0) else HW
    grid = (HW // n_tile,)
    return pl.pallas_call(
        _flat_blur_kernel,
        out_shape=jax.ShapeDtypeStruct((P, HW), jnp.float32),
        grid=grid,
        in_specs=[
            pl.BlockSpec((P, HW), lambda j: (0, 0)),        # whole x slab
            pl.BlockSpec((HW, n_tile), lambda j: (0, j)),   # operator column tile
        ],
        out_specs=pl.BlockSpec((P, n_tile), lambda j: (0, j)),
        compiler_params=pltpu.CompilerParams(
            dimension_semantics=("parallel",),
            vmem_limit_bytes=vmem_limit,
        ),
        cost_estimate=pl.CostEstimate(
            flops=2 * P * HW * HW,
            transcendentals=0,
            bytes_accessed=2 * P * HW + 2 * HW * HW + 4 * P * HW,
        ),
    )(x2d, mt)


# ---------------------------------------------------------------------------
# Path 2: separable two-pass banded matmul, batched over planes
#   out[p] = Gh @ X[p] @ Gw^T
# ---------------------------------------------------------------------------
def _sep_blur_kernel(gh_ref, gwt_ref, x_ref, o_ref, *, p_tile, H, W):
    # Pass 1 (along W): flatten planes into rows -> ONE matmul, M = p_tile*H,
    # lane-dense N = W (always a multiple of 128 by construction).
    x_flat = x_ref[...].reshape(p_tile * H, W)
    y = jnp.dot(x_flat, gwt_ref[...],
                preferred_element_type=jnp.float32)              # (p_tile*H, W) f32
    # Pass 2 (along H): batched matmul over the plane dim (einsum pattern
    # 'bqk,bkd->bqd').  Broadcast of Gh along the major dim is layout-free.
    y3 = y.astype(jnp.bfloat16).reshape(p_tile, H, W)
    gh_b = pl.broadcast_to(gh_ref[...], (p_tile, H, H))
    o_ref[...] = jnp.einsum(
        "phk,pkw->phw", gh_b, y3,
        preferred_element_type=jnp.float32,
    ).astype(o_ref.dtype)


def _choose_plane_tile(P: int, H: int, W: int, two_tc: bool,
                       vmem_budget_bytes: int) -> int:
    plane_bytes = H * W * 4
    # ~8 plane-sized f32-equivalent buffers live per plane of the tile:
    # double-buffered in (bf16) / out (f32) blocks + y / y3 / gh_b intermediates.
    max_by_vmem = vmem_budget_bytes // (8 * plane_bytes)
    if max_by_vmem < 1:
        # TODO(synk): row-tile H with a (K-1) halo and banded Gh row slices so
        #   HD/4K planes fit v7x's 64 MiB VMEM instead of failing here.
        raise NotImplementedError(
            f"a single {H}x{W} plane exceeds the per-step VMEM budget; "
            "large-image row tiling is not implemented")
    target_rows = 512                       # M >= 2x256 (v6e/v7x) and 4x128 (v5e)
    p_tile = max(1, min(_cdiv(target_rows, H), P, max_by_vmem))
    if two_tc and P > 1 and _cdiv(P, p_tile) < 2:
        p_tile = _cdiv(P, 2)                # keep both TensorCores busy
    return p_tile


def _separable_blur(x3d: jnp.ndarray, gh: jnp.ndarray, gwt: jnp.ndarray, *,
                    two_tc: bool, vmem_budget: int, vmem_limit: int) -> jnp.ndarray:
    P, H, W = x3d.shape                     # W already lane-padded by the caller
    p_tile = _choose_plane_tile(P, H, W, two_tc, vmem_budget)
    n_steps = _cdiv(P, p_tile)
    P_pad = n_steps * p_tile
    if P_pad != P:                          # pad plane axis instead of shrinking tile
        x3d = jnp.pad(x3d, ((0, P_pad - P), (0, 0), (0, 0)))
    out = pl.pallas_call(
        functools.partial(_sep_blur_kernel, p_tile=p_tile, H=H, W=W),
        out_shape=jax.ShapeDtypeStruct((P_pad, H, W), jnp.float32),
        grid=(n_steps,),
        in_specs=[
            pl.BlockSpec((H, H), lambda i: (0, 0)),            # Gh
            pl.BlockSpec((W, W), lambda i: (0, 0)),            # Gw^T (padded)
            pl.BlockSpec((p_tile, H, W), lambda i: (i, 0, 0)),
        ],
        out_specs=pl.BlockSpec((p_tile, H, W), lambda i: (i, 0, 0)),
        compiler_params=pltpu.CompilerParams(
            dimension_semantics=("parallel",),
            vmem_limit_bytes=vmem_limit,
        ),
        cost_estimate=pl.CostEstimate(
            flops=2 * P_pad * (H * W * W + W * H * H),
            transcendentals=0,
            bytes_accessed=2 * P_pad * H * W + 4 * P_pad * H * W
                           + 2 * (H * H + W * W),
        ),
    )(gh, gwt, x3d)
    return out[:P] if P_pad != P else out


# ---------------------------------------------------------------------------
# Forward (matches Blurkernel.forward for the gaussian init)
# ---------------------------------------------------------------------------
_FLAT_MAX_PIXELS = 1024   # fused (HW)^2 bf16 operator <= 2 MiB (traffic-aware cutoff)


def blurkernel_forward(x: jnp.ndarray, taps: np.ndarray, *, path: str = "auto") -> jnp.ndarray:
    """x: (B, C, H, W) NCHW; taps: (K,) 1-D Gaussian taps shared by all channels
    (the PyTorch module copies the same kernel into every depthwise filter)."""
    B, C, H, W = x.shape
    taps = np.asarray(taps, dtype=np.float64)
    K = int(taps.shape[0])
    assert K % 2 == 1, "kernel_size must be odd"
    assert K // 2 <= min(H, W) - 1, "reflection pad must fit the image"
    P = B * C
    HW = H * W

    vmem_budget, vmem_limit, two_tc = _chip_config()

    if path == "auto":
        path = "flat" if (HW % 128 == 0 and HW <= _FLAT_MAX_PIXELS) else "separable"

    xb = x.astype(jnp.bfloat16)             # single-pass MXU operands, f32 accumulate

    if path == "flat":
        assert HW % 128 == 0 and HW <= _FLAT_MAX_PIXELS
        mt = _flat_operator(H, W, taps.tobytes())
        out = _flat_blur(xb.reshape(P, HW), mt, two_tc=two_tc, vmem_limit=vmem_limit)
        return out.reshape(B, C, H, W)

    # Separable path: keep the stored lane dim a multiple of 128 (unmasked vst)
    # by zero-padding W and the banded Gw^T operator.
    W_pad = _cdiv(W, 128) * 128
    gh, gwt = _separable_operators(H, W, W_pad, taps.tobytes())
    x3d = xb.reshape(P, H, W)
    if W_pad != W:
        x3d = jnp.pad(x3d, ((0, 0), (0, 0), (0, W_pad - W)))
    out = _separable_blur(x3d, gh, gwt, two_tc=two_tc,
                          vmem_budget=vmem_budget, vmem_limit=vmem_limit)
    if W_pad != W:
        out = out[:, :, :W]
    return out.reshape(B, C, H, W)


# ---------------------------------------------------------------------------
# Pure-JAX reference (reflect pad + depthwise conv) for the sanity check
# ---------------------------------------------------------------------------
def _reference(x, taps):
    K = taps.shape[0]
    pad = K // 2
    C = x.shape[1]
    k2d = np.outer(taps, taps).astype(np.float32)
    w = jnp.asarray(np.broadcast_to(k2d, (C, 1, K, K)).copy())
    xp = jnp.pad(x, ((0, 0), (0, 0), (pad, pad), (pad, pad)), mode="reflect")
    return lax.conv_general_dilated(
        xp, w, window_strides=(1, 1), padding="VALID",
        dimension_numbers=("NCHW", "OIHW", "NCHW"),
        feature_group_count=C,
        precision=lax.Precision.HIGHEST,
    )


if __name__ == "__main__":
    # Channels are fixed to 3 by the module's Conv2d(3, 3, K, groups=3).
    kernel_size, std = 7, 0.7           # radius = int(4*0.7+0.5) = 3 = K//2
    taps = gaussian_taps(kernel_size, std)

    key = jax.random.PRNGKey(0)
    k1, k2 = jax.random.split(key)

    # bf16 MXU operands -> ~2-3 significant digits; reference is f32.
    TOL = dict(atol=5e-2, rtol=5e-2)

    # (1) Module-consistent tiny shape -> fused lane-dense flat path.
    B, C, H, W = 2, 3, 16, 16
    x = jax.random.normal(k1, (B, C, H, W), dtype=jnp.float32)
    out = jax.block_until_ready(blurkernel_forward(x, taps))
    ref = _reference(x, taps)
    assert out.shape == (B, C, H, W)
    assert jnp.allclose(out, ref, **TOL), "flat path mismatch vs reference conv"

    # (2) Separable two-pass path at a lane-dense size (W = 128).
    x2 = jax.random.normal(k2, (1, 3, 128, 128), dtype=jnp.float32)
    out2 = jax.block_until_ready(blurkernel_forward(x2, taps))
    ref2 = _reference(x2, taps)
    assert out2.shape == x2.shape
    assert jnp.allclose(out2, ref2, **TOL), "separable path mismatch vs reference conv"

    print("KERNEL_OK")
</pallas_src>

<mosaic_0001>
module attributes {stable_mosaic.version = 11 : i64} {
  func.func @_flat_blur_kernel(%arg0: i32, %arg1: memref<6x256xbf16, #tpu.memory_space<vmem>>, %arg2: memref<256x256xbf16, #tpu.memory_space<vmem>>, %arg3: memref<6x256xf32, #tpu.memory_space<vmem>>) attributes {dimension_semantics = [#tpu.dimension_semantics<parallel>], iteration_bounds = array<i64: 1>, scalar_prefetch = 0 : i64, scratch_operands = 0 : i64, tpu.core_type = #tpu.core_type<tc>, window_params = [{pipeline_mode = #tpu.pipeline_mode<synchronous>, transform_indices = @transform_0, window_bounds = array<i64: 6, 256>}, {transform_indices = @transform_1, window_bounds = array<i64: 256, 256>}, {transform_indices = @transform_2, window_bounds = array<i64: 6, 256>}]} {
    %c0 = arith.constant 0 : index
    %c0_0 = arith.constant 0 : index
    %0 = vector.load %arg1[%c0, %c0_0] : memref<6x256xbf16, #tpu.memory_space<vmem>>, vector<6x256xbf16>
    %c0_1 = arith.constant 0 : index
    %c0_2 = arith.constant 0 : index
    %1 = vector.load %arg2[%c0_1, %c0_2] : memref<256x256xbf16, #tpu.memory_space<vmem>>, vector<256x256xbf16>
    %cst = arith.constant dense<0.000000e+00> : vector<6x256xf32>
    %2 = tpu.matmul %0, %1, %cst {dimension_numbers = #tpu.dot_dimension_numbers<[1], [0], [0], [1], [0, 0, 1, 1], [], []>} : vector<6x256xbf16>, vector<256x256xbf16>, vector<6x256xf32> -> vector<6x256xf32>
    %c0_3 = arith.constant 0 : index
    %c0_4 = arith.constant 0 : index
    %3 = vector.load %arg3[%c0_3, %c0_4] : memref<6x256xf32, #tpu.memory_space<vmem>>, vector<6x256xf32>
    tpu.vector_store %arg3[%c0_3, %c0_4], %2 {strides = array<i32>} : memref<6x256xf32, #tpu.memory_space<vmem>>, vector<6x256xf32>,
    return
  }
  func.func @transform_0(%arg0: i32) -> (i32, i32) {
    %c0_i32 = arith.constant 0 : i32
    %c0_i32_0 = arith.constant 0 : i32
    %c0_i32_1 = arith.constant 0 : i32
    return %c0_i32, %c0_i32_0 : i32, i32
  }
  func.func @transform_1(%arg0: i32) -> (i32, i32) {
    %c0_i32 = arith.constant 0 : i32
    %c0_i32_0 = arith.constant 0 : i32
    return %c0_i32, %arg0 : i32, i32
  }
  func.func @transform_2(%arg0: i32) -> (i32, i32) {
    %c0_i32 = arith.constant 0 : i32
    %c0_i32_0 = arith.constant 0 : i32
    return %c0_i32, %arg0 : i32, i32
  }
}

</mosaic_0001>

<bundles_post_ra>
// kernel: tpu_custom_call.1
= control target key start
LH: loop header
LB: loop body
LE: loop exit
PB: predicated region body
PF: predicated region fallthrough
CT: control target
= control target key end

     0   :  { %7 = vsyncpa [#allocation3], 0  ;;  %s481_s0 = inlined_call_operand.hbm [shape: bf16[6,256], index: 0, kind: input, shape index: {}]   ;;  %s482_s1 = inlined_call_operand.hbm [shape: bf16[256,256], index: 1, kind: input, shape index: {}]   ;;  %s483_s2 = inlined_call_operand.hbm [shape: f32[6,256], index: 2, kind: output, shape index: {}]  }
   0x1   :  { %8 = vsyncpa [#allocation6], 0 }
   0x2   :  { %9 = vsyncpa [#allocation4], 0  ;;  %s452_s9 = smov [#allocation2]   ;;  %s453_s11 = smov [#allocation5]  }
   0x3   :  { %s16_s10 = sshll.u32 %s452_s9, 4  ;;  %s25_s12 = sshll.u32 %s453_s11, 4  ;;  %s17_s10 = int_to_ptr.vmem [resolvable:$true] %s16_s10  ;;  %s26_s12 = int_to_ptr.vmem [resolvable:$true] %s25_s12 }
   0x4   :  { %s394_s13 = scalar_lea.vmem %s17_s10, 128  ;;  %p399_p1 = scmp.lt.s32.totalorder %s17_s10, %s17_s10 }
   0x5   :  { %p395_p0 = scmp.ne.s32.totalorder %s17_s10, %s394_s13  ;;  %p400_p2 = scmp.lt.s32.totalorder %s394_s13, %s394_s13 }
   0x7   :  { %p401_p3 = por %p400_p2, %p399_p1 }
   0x9   :  { %p402_p4 = pnand %p401_p3, %p395_p0 }
   0xb   :  { %405 = shalt.err (!%p402_p4)
}
   0xc   :  { %19 = dma.hbm_to_vmem [thread:$0]  %s481_s0, 128, %s17_s10, [#allocation3]  }
   0xd   :  { %s414_s16 = scalar_lea.vmem %s26_s12, 4096  ;;  %p419_p6 = scmp.lt.s32.totalorder %s26_s12, %s26_s12 }
   0xe   :  { %p415_p5 = scmp.ne.s32.totalorder %s26_s12, %s414_s16  ;;  %p420_p7 = scmp.lt.s32.totalorder %s414_s16, %s414_s16 }
  0x10   :  { %p421_p8 = por %p420_p7, %p419_p6 }
  0x12   :  { %p422_p9 = pnand %p421_p8, %p415_p5 }
  0x14   :  { %425 = shalt.err (!%p422_p9)
}
  0x15   :  { %s454_s17 = smov 128   ;;  %s455_s18 = smov 8  }
  0x16   :  { %31 = dma.hbm_to_vmem [thread:$0]  %s482_s1, 4096, %s26_s12, [#allocation6], %s454_s17, %s454_s17, %s455_s18  }
  0x17   :  { %446 = dma.done.wait [#allocation3], 128  }
  0x18   :  { %447 = vsyncadd [#allocation3], 4294967168 }
  0x19   :  { %448 = dma.done.wait [#allocation6], 4096  }
  0x1a   :  { %449 = vsyncadd [#allocation6], 4294963200  ;;  %v336_v0 = vld [vmem:[#allocation5 + $0x74] ss:$8 sps:$4 sm:$0xff]   ;;  %v338_v1 = vld [vmem:[#allocation5 + $0x70] ss:$8 sps:$4 sm:$0xff]  }
  0x1b   :  { %238 = vmatprep.subr.bf16.mxu0 %v336_v0  ;;  %v339_v2 = vld [vmem:[#allocation5 + $0x64] ss:$8 sps:$4 sm:$0xff]   ;;  %v341_v3 = vld [vmem:[#allocation5 + $0x60] ss:$8 sps:$4 sm:$0xff]   ;;  %v342_v4 = vld [vmem:[#allocation5 + $0x54] ss:$8 sps:$4 sm:$0xff]  }
  0x1c   :  { %239 = vmatpush1.bf16.msra.mxu0 %v338_v1  ;;  %v344_v5 = vld [vmem:[#allocation5 + $0x50] ss:$8 sps:$4 sm:$0xff]   ;;  %v345_v6 = vld [vmem:[#allocation5 + $0x44] ss:$8 sps:$4 sm:$0xff]   ;;  %v347_v7 = vld [vmem:[#allocation5 + $0x40] ss:$8 sps:$4 sm:$0xff]  }
  0x1d   :  { %240 = vmatprep.subr.bf16.mxu0 %v339_v2  ;;  %v348_v8 = vld [vmem:[#allocation5 + $0x34] ss:$8 sps:$4 sm:$0xff]   ;;  %v350_v9 = vld [vmem:[#allocation5 + $0x30] ss:$8 sps:$4 sm:$0xff]   ;;  %v351_v10 = vld [vmem:[#allocation5 + $0x24] ss:$8 sps:$4 sm:$0xff]  }
  0x1e   :  { %v353_v11 = vld [vmem:[#allocation5 + $0x20] ss:$8 sps:$4 sm:$0xff]   ;;  %v354_v12 = vld [vmem:[#allocation5 + $0x14] ss:$8 sps:$4 sm:$0xff]   ;;  %v356_v15 = vld [vmem:[#allocation5 + $0x10] ss:$8 sps:$4 sm:$0xff]  }
  0x1f   :  { %v38_v13 = vld [vmem:[#allocation2] sm:$0x77]  ;;  %v357_v16 = vld [vmem:[#allocation5 + $0x4] ss:$8 sps:$4 sm:$0xff]   ;;  %v359_v17 = vld [vmem:[#allocation5] ss:$8 sps:$4 sm:$0xff]  }
  0x20   :  { %241 = vmatpush1.bf16.msra.mxu0 %v341_v3  ;;  %v298_v14 = vcombine.high %v38_v13, %v38_v13  ;;  %v360_v18 = vld [vmem:[#allocation5 + $0xf4] ss:$8 sps:$4 sm:$0xff]   ;;  %v362_v19 = vld [vmem:[#allocation5 + $0xf0] ss:$8 sps:$4 sm:$0xff]   ;;  %v363_v20 = vld [vmem:[#allocation5 + $0xe4] ss:$8 sps:$4 sm:$0xff]   ;;  %v297_v34 = vcombine.low %v38_v13, %v38_v13 }
  0x21   :  { %242 = vmatprep.subr.bf16.mxu0 %v342_v4  ;;  %v365_v21 = vld [vmem:[#allocation5 + $0xe0] ss:$8 sps:$4 sm:$0xff]   ;;  %v366_v22 = vld [vmem:[#allocation5 + $0xd4] ss:$8 sps:$4 sm:$0xff]   ;;  %v368_v23 = vld [vmem:[#allocation5 + $0xd0] ss:$8 sps:$4 sm:$0xff]  }
  0x22   :  { %270 = vmatprep.mubr.bf16.mxu0 %v298_v14  ;;  %v369_v24 = vld [vmem:[#allocation5 + $0xc4] ss:$8 sps:$4 sm:$0xff]   ;;  %v371_v25 = vld [vmem:[#allocation5 + $0xc0] ss:$8 sps:$4 sm:$0xff]   ;;  %v372_v26 = vld [vmem:[#allocation5 + $0xb4] ss:$8 sps:$4 sm:$0xff]  }
  0x23   :  { %v374_v27 = vld [vmem:[#allocation5 + $0xb0] ss:$8 sps:$4 sm:$0xff]   ;;  %v375_v28 = vld [vmem:[#allocation5 + $0xa4] ss:$8 sps:$4 sm:$0xff]   ;;  %v377_v29 = vld [vmem:[#allocation5 + $0xa0] ss:$8 sps:$4 sm:$0xff]  }
  0x24   :  { %243 = vmatpush1.bf16.msra.mxu0 %v344_v5  ;;  %v378_v30 = vld [vmem:[#allocation5 + $0x94] ss:$8 sps:$4 sm:$0xff]   ;;  %v380_v31 = vld [vmem:[#allocation5 + $0x90] ss:$8 sps:$4 sm:$0xff]   ;;  %v381_v32 = vld [vmem:[#allocation5 + $0x84] ss:$8 sps:$4 sm:$0xff]  }
  0x25   :  { %244 = vmatprep.subr.bf16.mxu0 %v345_v6  ;;  %v383_v33 = vld [vmem:[#allocation5 + $0x80] ss:$8 sps:$4 sm:$0xff]   ;;  %s456_s0 = smov [#allocation7]  }
  0x26   :  { %s287_s1 = sshll.u32 %s456_s0, 4  ;;  %s288_s1 = int_to_ptr.vmem [resolvable:$true] %s287_s1 }
  0x27   :  { %s426_s21 = scalar_lea.vmem %s288_s1, 256  ;;  %p431_p11 = scmp.lt.s32.totalorder %s288_s1, %s288_s1 }
  0x28   :  { %245 = vmatpush1.bf16.msra.mxu0 %v347_v7  ;;  %p427_p10 = scmp.ne.s32.totalorder %s288_s1, %s426_s21  ;;  %p432_p12 = scmp.lt.s32.totalorder %s426_s21, %s426_s21 }
  0x29   :  { %246 = vmatprep.subr.bf16.mxu0 %v348_v8 }
  0x2a   :  { %p433_p13 = por %p432_p12, %p431_p11 }
  0x2c   :  { %247 = vmatpush1.bf16.msra.mxu0 %v350_v9  ;;  %p434_p0 = pnand %p433_p13, %p427_p10 }
  0x2d   :  { %248 = vmatprep.subr.bf16.mxu0 %v351_v10 }
  0x30   :  { %249 = vmatpush1.bf16.msra.mxu0 %v353_v11 }
  0x31   :  { %250 = vmatprep.subr.bf16.mxu0 %v354_v12 }
  0x34   :  { %251 = vmatpush1.bf16.msra.mxu0 %v356_v15 }
  0x35   :  { %252 = vmatprep.subr.bf16.mxu0 %v357_v16 }
  0x38   :  { %253 = vmatpush1.bf16.msra.mxu0 %v359_v17 }
  0x39   :  { %254 = vmatprep.subr.bf16.mxu0 %v360_v18 }
  0x3c   :  { %255 = vmatpush2.bf16.msra.mxu0 %v362_v19 }
  0x3d   :  { %256 = vmatprep.subr.bf16.mxu0 %v363_v20 }
  0x40   :  { %257 = vmatpush2.bf16.msra.mxu0 %v365_v21 }
  0x41   :  { %258 = vmatprep.subr.bf16.mxu0 %v366_v22 }
  0x44   :  { %259 = vmatpush2.bf16.msra.mxu0 %v368_v23 }
  0x45   :  { %260 = vmatprep.subr.bf16.mxu0 %v369_v24 }
  0x48   :  { %261 = vmatpush2.bf16.msra.mxu0 %v371_v25 }
  0x49   :  { %262 = vmatprep.subr.bf16.mxu0 %v372_v26 }
  0x4c   :  { %263 = vmatpush2.bf16.msra.mxu0 %v374_v27 }
  0x4d   :  { %264 = vmatprep.subr.bf16.mxu0 %v375_v28 }
  0x50   :  { %265 = vmatpush2.bf16.msra.mxu0 %v377_v29 }
  0x51   :  { %266 = vmatprep.subr.bf16.mxu0 %v378_v30 }
  0x54   :  { %267 = vmatpush2.bf16.msra.mxu0 %v380_v31 }
  0x55   :  { %268 = vmatprep.subr.bf16.mxu0 %v381_v32 }
  0x58   :  { %269 = vmatpush2.bf16.msra.mxu0 %v383_v33 }
  0x5b   :  { %271 = vmatmul.mubr.bf16.vlgmr.msra.gmra.mxu0 %v297_v34 }
 0x11b   :  { %v272_v35 = vpop.f32.mrf.mxu0 }
 0x11c   :  { %279 = vst [vmem:[#allocation7] sm:$0x3f] %v272_v35 }
 0x11d   :  { %v274_v36 = vpop.f32.mrf.mxu0 }
 0x11e   :  { %280 = vst [vmem:[#allocation7 + $0x8] sm:$0x3f] %v274_v36 }
 0x11f   :  { %v276_v37 = vpop.f32.mrf.mxu0 }
 0x120   :  { %437 = shalt.err (!%p434_p0)
}
 0x121   :  { %290 = dma.vmem_to_hbm [thread:$0]  %s288_s1, 256, %s483_s2, [#allocation4]   ;;  %v277_v38 = vpop.f32.mrf.mxu0 }
 0x122   :  { %450 = dma.done.wait [#allocation4], 256  }
 0x123   :  { %451 = vsyncadd [#allocation4], 4294967040 }
 0x124   :  { %294 = vsyncpa [#allocation3], 1 }
 0x125   :  { %295 = vsyncpa [#allocation6], 1 }
 0x126   :  { %296 = vsyncpa [#allocation4], 1 }

</bundles_post_ra>
